<compile_context>
chip_gen: v6e
topology: v6e:2x2x1
jax: 0.10.0
libtpu: 0.0.40
codegen_flags: <defaults>
</compile_context>

<pallas_src>
import functools

import jax
import jax.numpy as jnp
import numpy as np
from jax.experimental import pallas as pl
from jax.experimental.pallas import tpu as pltpu


# ---------------------------------------------------------------------------
# Fused kernel
# ---------------------------------------------------------------------------
def _crelu_fused_kernel(*refs, H, W, has_skip_conv, dot_dtype):
    # All activations use a transposed (C, M) layout, M = H*W (lane-dense).
    #   x_ref    : (1, Cin, M)        input image (free reshape of NCHW)
    #   wd_ref   : (C0, Cin)          down_1x1 weight (transposed)
    #   sd/bd    : (C0, 1)            folded BN scale / bias for down_1x1
    #   wc_ref   : (C1, 9*C0)         3x3 weight as an im2col matrix
    #   sp/bp    : (C1, 1)            folded BN * CatScaleShift affine (+ branch)
    #   sn/bn    : (C1, 1)            folded BN * CatScaleShift affine (- branch)
    #   wpp/wpn  : (C2, C1)           up_1x1 weight split into pos / neg halves
    #   su/bu    : (C2, 1)            folded BN scale / bias for up_1x1
    #   wsk/bsk  : (C2, Cin), (C2,1)  skip 1x1 conv (only if has_skip_conv)
    #   o_ref    : (1, C2, M)         output (free reshape back to NCHW)
    #   ypad_ref : (C0, (H+2)*W + 2)  VMEM scratch: halo-padded down_1x1 output
    *in_refs, o_ref, ypad_ref = refs
    if has_skip_conv:
        (x_ref, wd_ref, sd_ref, bd_ref,
         wc_ref, sp_ref, bp_ref, sn_ref, bn_ref,
         wpp_ref, wpn_ref, su_ref, bu_ref, wsk_ref, bsk_ref) = in_refs
    else:
        (x_ref, wd_ref, sd_ref, bd_ref,
         wc_ref, sp_ref, bp_ref, sn_ref, bn_ref,
         wpp_ref, wpn_ref, su_ref, bu_ref) = in_refs
        wsk_ref = bsk_ref = None

    M = H * W
    xT = x_ref[0]                                   # (Cin, M) f32
    xTd = xT.astype(dot_dtype)

    # ---- down_1x1: relu(BN(conv1x1)) in transposed layout -> (C0, M) --------
    y0 = jnp.dot(wd_ref[...], xTd, preferred_element_type=jnp.float32)
    y0 = jnp.maximum(y0 * sd_ref[...] + bd_ref[...], 0.0)
    c0 = y0.shape[0]

    # ---- 3x3 'cat' conv: halo built in VMEM scratch + ONE im2col matmul -----
    # scratch layout (per channel, flattened):
    #   [1 zero] | W zeros (top halo row) | y0 (H*W) | W zeros (bottom halo) | [1 zero]
    ypad_ref[:, :W + 1] = jnp.zeros((c0, W + 1), jnp.float32)
    ypad_ref[:, W + 1 + M:] = jnp.zeros((c0, W + 1), jnp.float32)
    ypad_ref[:, W + 1:W + 1 + M] = y0

    lane = jax.lax.broadcasted_iota(jnp.int32, (c0, M), 1)
    col = lane % W
    not_left = col >= 1          # valid source columns for dx == 0 taps
    not_right = col <= W - 2     # valid source columns for dx == 2 taps

    taps = []
    for dy in range(3):
        for dx in range(3):
            # tap(dy,dx)[p] = padded_image[(h+dy)*W + (w+dx-1)], p = h*W + w
            t = ypad_ref[:, dy * W + dx: dy * W + dx + M]       # (C0, M)
            if dx == 0:
                t = jnp.where(not_left, t, 0.0)
            elif dx == 2:
                t = jnp.where(not_right, t, 0.0)
            taps.append(t)
    cols = jnp.concatenate(taps, axis=0)                        # (9*C0, M), sublane concat
    acc = jnp.dot(wc_ref[...], cols.astype(dot_dtype),
                  preferred_element_type=jnp.float32)           # (C1, M)

    # ---- CatScaleShift + ReLU: pos / neg kept separate (no concat) ----------
    pos = jnp.maximum(acc * sp_ref[...] + bp_ref[...], 0.0)
    neg = jnp.maximum(-acc * sn_ref[...] + bn_ref[...], 0.0)

    # ---- up_1x1: cat([pos, neg]) @ W_up == pos @ W_pos + neg @ W_neg --------
    z = (jnp.dot(wpp_ref[...], pos.astype(dot_dtype), preferred_element_type=jnp.float32)
         + jnp.dot(wpn_ref[...], neg.astype(dot_dtype), preferred_element_type=jnp.float32))
    z = jnp.maximum(z * su_ref[...] + bu_ref[...], 0.0)         # (C2, M)

    # ---- skip path + residual add (after the ReLU, as in forward()) ---------
    if has_skip_conv:
        skip = jnp.dot(wsk_ref[...], xTd,
                       preferred_element_type=jnp.float32) + bsk_ref[...]
    else:
        skip = xT                                               # Identity (Cin == C2)
    o_ref[0] = (z + skip).astype(o_ref.dtype)


# ---------------------------------------------------------------------------
# Parameter folding and the fused forward
# ---------------------------------------------------------------------------
def fold_bn(conv_bias, gamma, beta, mean, var, eps=1e-5):
    s = gamma / jnp.sqrt(var + eps)
    b = (conv_bias - mean) * s + beta
    return s, b


def crelu_sequence_forward(x_nchw, p, in_c, out, *, dot_dtype=jnp.float32):
    """Fused CReLUSequence forward: (N, in_c, H, W) -> (N, out[2], H, W)."""
    c0, c1, c2 = out
    n, cin, h, w = x_nchw.shape
    assert cin == in_c
    m = h * w
    # NCHW -> (N, C, H*W): a pure reshape (no transpose). H*W becomes the TPU
    # lane axis, so the kernel's HBM loads / stores are lane-dense.
    x3d = x_nchw.reshape(n, in_c, m).astype(jnp.float32)

    # Fold BatchNorm (eval mode) + CatScaleShift into per-channel affines.
    s_d, b_d = fold_bn(p["b_down"], *p["bn_down"])
    s_c, b_c = fold_bn(p["b_cat"], *p["bn_cat"])
    w1, w2 = p["css_w"][:c1], p["css_w"][c1:]
    cb1, cb2 = p["css_b"][:c1], p["css_b"][c1:]
    sp, bp = s_c * w1, b_c * w1 + cb1              # + branch:  BN(y) * w1 + b1
    sn, bneg = s_c * w2, -b_c * w2 + cb2           # - branch: -BN(y) * w2 + b2
    s_u, b_u = fold_bn(p["b_up"], *p["bn_up"])

    dd = dot_dtype
    wd_t = p["w_down"].T.astype(dd)                                       # (c0, in_c)
    wc9 = jnp.transpose(p["w_cat"], (3, 0, 1, 2)).reshape(c1, 9 * c0).astype(dd)
    wup_p = p["w_up"][:c1].T.astype(dd)                                   # (c2, c1)
    wup_n = p["w_up"][c1:].T.astype(dd)                                   # (c2, c1)

    def cvec(v, c):
        return jnp.asarray(v, jnp.float32).reshape(c, 1)

    inputs = [x3d, wd_t, cvec(s_d, c0), cvec(b_d, c0),
              wc9, cvec(sp, c1), cvec(bp, c1), cvec(sn, c1), cvec(bneg, c1),
              wup_p, wup_n, cvec(s_u, c2), cvec(b_u, c2)]
    has_skip_conv = "w_skip" in p
    if has_skip_conv:
        inputs += [p["w_skip"].T.astype(dd), cvec(p["b_skip"], c2)]

    in_specs = [pl.BlockSpec((1, in_c, m), lambda b: (b, 0, 0))]
    in_specs += [pl.BlockSpec(a.shape, lambda b: (0, 0)) for a in inputs[1:]]

    kern = functools.partial(_crelu_fused_kernel, H=h, W=w,
                             has_skip_conv=has_skip_conv, dot_dtype=dd)
    out3d = pl.pallas_call(
        kern,
        out_shape=jax.ShapeDtypeStruct((n, c2, m), jnp.float32),
        grid=(n,),
        in_specs=in_specs,
        out_specs=pl.BlockSpec((1, c2, m), lambda b: (b, 0, 0)),
        scratch_shapes=[pltpu.VMEM((c0, (h + 2) * w + 2), jnp.float32)],
        compiler_params=pltpu.CompilerParams(
            dimension_semantics=("parallel",),
            vmem_limit_bytes=32 * 1024 * 1024),
    )(*inputs)
    return out3d.reshape(n, c2, h, w)


# ---------------------------------------------------------------------------
# Deterministic synthetic parameters
# ---------------------------------------------------------------------------
def init_params(key, in_c, out, ks=3):
    c0, c1, c2 = out
    keys = jax.random.split(key, 24)

    def nrm(k, shape, scale=0.1):
        return scale * jax.random.normal(k, shape, dtype=jnp.float32)

    def bn_params(k0, k1, k2, k3, c):
        gamma = 1.0 + nrm(k0, (c,), 0.05)
        beta = nrm(k1, (c,), 0.05)
        mean = nrm(k2, (c,), 0.05)
        var = 1.0 + jnp.abs(nrm(k3, (c,), 0.1))
        return gamma, beta, mean, var

    p = {}
    p["w_down"] = nrm(keys[0], (in_c, c0))
    p["b_down"] = nrm(keys[1], (c0,), 0.05)
    p["bn_down"] = bn_params(keys[2], keys[3], keys[4], keys[5], c0)
    p["w_cat"] = nrm(keys[6], (ks, ks, c0, c1))          # HWIO
    p["b_cat"] = nrm(keys[7], (c1,), 0.05)
    p["bn_cat"] = bn_params(keys[8], keys[9], keys[10], keys[11], c1)
    p["css_w"] = jnp.ones((2 * c1,), jnp.float32)        # CatScaleShift init_weight=1.0
    p["css_b"] = jnp.zeros((2 * c1,), jnp.float32)       # CatScaleShift init_bias=0.0
    p["w_up"] = nrm(keys[12], (2 * c1, c2))
    p["b_up"] = nrm(keys[13], (c2,), 0.05)
    p["bn_up"] = bn_params(keys[14], keys[15], keys[16], keys[17], c2)
    if in_c != c2:                                       # skip_adaptive: Conv2d(in_c, c2, 1)
        p["w_skip"] = nrm(keys[18], (in_c, c2))
        p["b_skip"] = nrm(keys[19], (c2,), 0.05)
    return p


# ---------------------------------------------------------------------------
# Pure-JAX reference (lax.conv) for correctness checking
# ---------------------------------------------------------------------------
def reference_forward(x_nchw, p, in_c, out):
    c0, c1, c2 = out
    x = jnp.transpose(x_nchw, (0, 2, 3, 1)).astype(jnp.float32)

    def conv2d(xh, w4, pad):
        return jax.lax.conv_general_dilated(
            xh, w4, window_strides=(1, 1), padding=pad,
            dimension_numbers=("NHWC", "HWIO", "NHWC"))

    def bn(y, prm):
        g, b, mmean, v = prm
        return (y - mmean) / jnp.sqrt(v + 1e-5) * g + b

    y = conv2d(x, p["w_down"].reshape(1, 1, in_c, c0), [(0, 0), (0, 0)]) + p["b_down"]
    y = jnp.maximum(bn(y, p["bn_down"]), 0.0)
    y = conv2d(y, p["w_cat"], [(1, 1), (1, 1)]) + p["b_cat"]
    y = bn(y, p["bn_cat"])
    y = jnp.concatenate([y, -y], axis=-1) * p["css_w"] + p["css_b"]
    y = jnp.maximum(y, 0.0)
    y = conv2d(y, p["w_up"].reshape(1, 1, 2 * c1, c2), [(0, 0), (0, 0)]) + p["b_up"]
    y = jnp.maximum(bn(y, p["bn_up"]), 0.0)
    if "w_skip" in p:
        skip = conv2d(x, p["w_skip"].reshape(1, 1, in_c, c2), [(0, 0), (0, 0)]) + p["b_skip"]
    else:
        skip = x
    return jnp.transpose(y + skip, (0, 3, 1, 2))


# ---------------------------------------------------------------------------
if __name__ == "__main__":
    N, H, W = 2, 16, 16
    key = jax.random.PRNGKey(0)
    kx, kp, kx2, kp2 = jax.random.split(key, 4)

    # Config 1: in_c != out[-1] -> 1x1 skip conv is fused into the kernel.
    in_c, out = 4, (8, 8, 16)
    x = jax.random.normal(kx, (N, in_c, H, W), dtype=jnp.float32)   # NCHW, like PyTorch
    params = init_params(kp, in_c, out)

    y = jax.block_until_ready(crelu_sequence_forward(x, params, in_c, out))
    assert y.shape == (N, out[2], H, W), y.shape
    y_ref = reference_forward(x, params, in_c, out)
    np.testing.assert_allclose(np.asarray(y), np.asarray(y_ref), rtol=1e-4, atol=1e-4)

    # bf16 MXU operands (v6e / v7x path), f32 accumulation + elementwise.
    y_bf16 = jax.block_until_ready(
        crelu_sequence_forward(x, params, in_c, out, dot_dtype=jnp.bfloat16))
    np.testing.assert_allclose(np.asarray(y_bf16), np.asarray(y_ref), rtol=0.15, atol=0.15)

    # Config 2: in_c == out[-1] -> identity skip (no skip conv).
    in_c2, out2 = 16, (8, 8, 16)
    x2 = jax.random.normal(kx2, (N, in_c2, H, W), dtype=jnp.float32)
    params2 = init_params(kp2, in_c2, out2)
    y2 = jax.block_until_ready(crelu_sequence_forward(x2, params2, in_c2, out2))
    y2_ref = reference_forward(x2, params2, in_c2, out2)
    np.testing.assert_allclose(np.asarray(y2), np.asarray(y2_ref), rtol=1e-4, atol=1e-4)

    print("KERNEL_OK")
</pallas_src>

<mosaic_0001>
module attributes {stable_mosaic.version = 11 : i64} {
  func.func @_crelu_fused_kernel(%arg0: i32, %arg1: memref<1x4x256xf32, #tpu.memory_space<vmem>>, %arg2: memref<8x4xf32, #tpu.memory_space<vmem>>, %arg3: memref<8x1xf32, #tpu.memory_space<vmem>>, %arg4: memref<8x1xf32, #tpu.memory_space<vmem>>, %arg5: memref<8x72xf32, #tpu.memory_space<vmem>>, %arg6: memref<8x1xf32, #tpu.memory_space<vmem>>, %arg7: memref<8x1xf32, #tpu.memory_space<vmem>>, %arg8: memref<8x1xf32, #tpu.memory_space<vmem>>, %arg9: memref<8x1xf32, #tpu.memory_space<vmem>>, %arg10: memref<16x8xf32, #tpu.memory_space<vmem>>, %arg11: memref<16x8xf32, #tpu.memory_space<vmem>>, %arg12: memref<16x1xf32, #tpu.memory_space<vmem>>, %arg13: memref<16x1xf32, #tpu.memory_space<vmem>>, %arg14: memref<16x4xf32, #tpu.memory_space<vmem>>, %arg15: memref<16x1xf32, #tpu.memory_space<vmem>>, %arg16: memref<1x16x256xf32, #tpu.memory_space<vmem>>, %arg17: memref<8x290xf32, #tpu.memory_space<vmem>>) attributes {dimension_semantics = [#tpu.dimension_semantics<parallel>], iteration_bounds = array<i64: 2>, scalar_prefetch = 0 : i64, scratch_operands = 1 : i64, tpu.core_type = #tpu.core_type<tc>, window_params = [{transform_indices = @transform_0, window_bounds = array<i64: 1, 4, 256>}, {pipeline_mode = #tpu.pipeline_mode<synchronous>, transform_indices = @transform_1, window_bounds = array<i64: 8, 4>}, {pipeline_mode = #tpu.pipeline_mode<synchronous>, transform_indices = @transform_2, window_bounds = array<i64: 8, 1>}, {pipeline_mode = #tpu.pipeline_mode<synchronous>, transform_indices = @transform_3, window_bounds = array<i64: 8, 1>}, {pipeline_mode = #tpu.pipeline_mode<synchronous>, transform_indices = @transform_4, window_bounds = array<i64: 8, 72>}, {pipeline_mode = #tpu.pipeline_mode<synchronous>, transform_indices = @transform_5, window_bounds = array<i64: 8, 1>}, {pipeline_mode = #tpu.pipeline_mode<synchronous>, transform_indices = @transform_6, window_bounds = array<i64: 8, 1>}, {pipeline_mode = #tpu.pipeline_mode<synchronous>, transform_indices = @transform_7, window_bounds = array<i64: 8, 1>}, {pipeline_mode = #tpu.pipeline_mode<synchronous>, transform_indices = @transform_8, window_bounds = array<i64: 8, 1>}, {pipeline_mode = #tpu.pipeline_mode<synchronous>, transform_indices = @transform_9, window_bounds = array<i64: 16, 8>}, {pipeline_mode = #tpu.pipeline_mode<synchronous>, transform_indices = @transform_10, window_bounds = array<i64: 16, 8>}, {pipeline_mode = #tpu.pipeline_mode<synchronous>, transform_indices = @transform_11, window_bounds = array<i64: 16, 1>}, {pipeline_mode = #tpu.pipeline_mode<synchronous>, transform_indices = @transform_12, window_bounds = array<i64: 16, 1>}, {pipeline_mode = #tpu.pipeline_mode<synchronous>, transform_indices = @transform_13, window_bounds = array<i64: 16, 4>}, {pipeline_mode = #tpu.pipeline_mode<synchronous>, transform_indices = @transform_14, window_bounds = array<i64: 16, 1>}, {transform_indices = @transform_15, window_bounds = array<i64: 1, 16, 256>}]} {
    %c0 = arith.constant 0 : index
    %c0_0 = arith.constant 0 : index
    %c0_1 = arith.constant 0 : index
    %0 = vector.load %arg1[%c0, %c0_0, %c0_1] : memref<1x4x256xf32, #tpu.memory_space<vmem>>, vector<1x4x256xf32>
    %1 = vector.shape_cast %0 : vector<1x4x256xf32> to vector<4x256xf32>
    %c0_2 = arith.constant 0 : index
    %c0_3 = arith.constant 0 : index
    %2 = vector.load %arg2[%c0_2, %c0_3] : memref<8x4xf32, #tpu.memory_space<vmem>>, vector<8x4xf32>
    %cst = arith.constant dense<0.000000e+00> : vector<8x256xf32>
    %3 = tpu.matmul %2, %1, %cst {dimension_numbers = #tpu.dot_dimension_numbers<[1], [0], [0], [1], [0, 0, 1, 1], [], []>} : vector<8x4xf32>, vector<4x256xf32>, vector<8x256xf32> -> vector<8x256xf32>
    %c0_4 = arith.constant 0 : index
    %c0_5 = arith.constant 0 : index
    %4 = vector.load %arg3[%c0_4, %c0_5] : memref<8x1xf32, #tpu.memory_space<vmem>>, vector<8x1xf32>
    %5 = vector.broadcast %4 : vector<8x1xf32> to vector<8x256xf32>
    %6 = arith.mulf %3, %5 : vector<8x256xf32>
    %c0_6 = arith.constant 0 : index
    %c0_7 = arith.constant 0 : index
    %7 = vector.load %arg4[%c0_6, %c0_7] : memref<8x1xf32, #tpu.memory_space<vmem>>, vector<8x1xf32>
    %8 = vector.broadcast %7 : vector<8x1xf32> to vector<8x256xf32>
    %9 = arith.addf %6, %8 : vector<8x256xf32>
    %cst_8 = arith.constant 0.000000e+00 : f32
    %10 = vector.broadcast %cst_8 : f32 to vector<8x256xf32>
    %11 = arith.maximumf %9, %10 : vector<8x256xf32>
    %cst_9 = arith.constant 0.000000e+00 : f32
    %12 = vector.broadcast %cst_9 : f32 to vector<8x17xf32>
    %c0_10 = arith.constant 0 : index
    %c0_11 = arith.constant 0 : index
    %13 = vector.load %arg17[%c0_10, %c0_11] : memref<8x290xf32, #tpu.memory_space<vmem>>, vector<8x17xf32>
    tpu.vector_store %arg17[%c0_10, %c0_11], %12 {strides = array<i32>} : memref<8x290xf32, #tpu.memory_space<vmem>>, vector<8x17xf32>,
    %cst_12 = arith.constant 0.000000e+00 : f32
    %14 = vector.broadcast %cst_12 : f32 to vector<8x17xf32>
    %c0_13 = arith.constant 0 : index
    %c273 = arith.constant 273 : index
    %15 = vector.load %arg17[%c0_13, %c273] : memref<8x290xf32, #tpu.memory_space<vmem>>, vector<8x17xf32>
    tpu.vector_store %arg17[%c0_13, %c273], %14 {strides = array<i32>} : memref<8x290xf32, #tpu.memory_space<vmem>>, vector<8x17xf32>,
    %c0_14 = arith.constant 0 : index
    %c17 = arith.constant 17 : index
    %16 = vector.load %arg17[%c0_14, %c17] : memref<8x290xf32, #tpu.memory_space<vmem>>, vector<8x256xf32>
    tpu.vector_store %arg17[%c0_14, %c17], %11 {strides = array<i32>} : memref<8x290xf32, #tpu.memory_space<vmem>>, vector<8x256xf32>,
    %17 = tpu.iota {dimensions = array<i32: 1>} : vector<8x256xi32>
    %c16_i32 = arith.constant 16 : i32
    %c0_i32 = arith.constant 0 : i32
    %18 = arith.cmpi eq, %c16_i32, %c0_i32 : i32
    %c1_i32 = arith.constant 1 : i32
    %19 = arith.select %18, %c1_i32, %c16_i32 : i32
    %20 = vector.broadcast %19 : i32 to vector<8x256xi32>
    %21 = arith.remsi %17, %20 : vector<8x256xi32>
    %c0_i32_15 = arith.constant 0 : i32
    %22 = vector.broadcast %c0_i32_15 : i32 to vector<8x256xi32>
    %23 = arith.cmpi ne, %21, %22 : vector<8x256xi32>
    %c0_i32_16 = arith.constant 0 : i32
    %24 = vector.broadcast %c0_i32_16 : i32 to vector<8x256xi32>
    %25 = arith.cmpi slt, %21, %24 : vector<8x256xi32>
    %c0_i32_17 = arith.constant 0 : i32
    %26 = arith.cmpi slt, %19, %c0_i32_17 : i32
    %27 = vector.broadcast %26 : i1 to vector<8x256xi1>
    %28 = vector.broadcast %27 : vector<8x256xi1> to vector<8x256xi1>
    %29 = arith.xori %25, %28 : vector<8x256xi1>
    %30 = arith.andi %29, %23 : vector<8x256xi1>
    %31 = vector.broadcast %19 : i32 to vector<8x256xi32>
    %32 = arith.addi %21, %31 : vector<8x256xi32>
    %33 = arith.select %30, %32, %21 : vector<8x256xi1>, vector<8x256xi32>
    %c1_i32_18 = arith.constant 1 : i32
    %34 = vector.broadcast %c1_i32_18 : i32 to vector<8x256xi32>
    %35 = arith.cmpi sge, %33, %34 : vector<8x256xi32>
    %c14_i32 = arith.constant 14 : i32
    %36 = vector.broadcast %c14_i32 : i32 to vector<8x256xi32>
    %37 = arith.cmpi sle, %33, %36 : vector<8x256xi32>
    %c0_19 = arith.constant 0 : index
    %c0_20 = arith.constant 0 : index
    %38 = vector.load %arg17[%c0_19, %c0_20] : memref<8x290xf32, #tpu.memory_space<vmem>>, vector<8x256xf32>
    %cst_21 = arith.constant 0.000000e+00 : f32
    %39 = vector.broadcast %cst_21 : f32 to vector<8x256xf32>
    %40 = arith.select %35, %38, %39 : vector<8x256xi1>, vector<8x256xf32>
    %c0_22 = arith.constant 0 : index
    %c1 = arith.constant 1 : index
    %41 = vector.load %arg17[%c0_22, %c1] : memref<8x290xf32, #tpu.memory_space<vmem>>, vector<8x256xf32>
    %c0_23 = arith.constant 0 : index
    %c2 = arith.constant 2 : index
    %42 = vector.load %arg17[%c0_23, %c2] : memref<8x290xf32, #tpu.memory_space<vmem>>, vector<8x256xf32>
    %cst_24 = arith.constant 0.000000e+00 : f32
    %43 = vector.broadcast %cst_24 : f32 to vector<8x256xf32>
    %44 = arith.select %37, %42, %43 : vector<8x256xi1>, vector<8x256xf32>
    %c0_25 = arith.constant 0 : index
    %c16 = arith.constant 16 : index
    %45 = vector.load %arg17[%c0_25, %c16] : memref<8x290xf32, #tpu.memory_space<vmem>>, vector<8x256xf32>
    %cst_26 = arith.constant 0.000000e+00 : f32
    %46 = vector.broadcast %cst_26 : f32 to vector<8x256xf32>
    %47 = arith.select %35, %45, %46 : vector<8x256xi1>, vector<8x256xf32>
    %c0_27 = arith.constant 0 : index
    %c17_28 = arith.constant 17 : index
    %48 = vector.load %arg17[%c0_27, %c17_28] : memref<8x290xf32, #tpu.memory_space<vmem>>, vector<8x256xf32>
    %c0_29 = arith.constant 0 : index
    %c18 = arith.constant 18 : index
    %49 = vector.load %arg17[%c0_29, %c18] : memref<8x290xf32, #tpu.memory_space<vmem>>, vector<8x256xf32>
    %cst_30 = arith.constant 0.000000e+00 : f32
    %50 = vector.broadcast %cst_30 : f32 to vector<8x256xf32>
    %51 = arith.select %37, %49, %50 : vector<8x256xi1>, vector<8x256xf32>
    %c0_31 = arith.constant 0 : index
    %c32 = arith.constant 32 : index
    %52 = vector.load %arg17[%c0_31, %c32] : memref<8x290xf32, #tpu.memory_space<vmem>>, vector<8x256xf32>
    %cst_32 = arith.constant 0.000000e+00 : f32
    %53 = vector.broadcast %cst_32 : f32 to vector<8x256xf32>
    %54 = arith.select %35, %52, %53 : vector<8x256xi1>, vector<8x256xf32>
    %c0_33 = arith.constant 0 : index
    %c33 = arith.constant 33 : index
    %55 = vector.load %arg17[%c0_33, %c33] : memref<8x290xf32, #tpu.memory_space<vmem>>, vector<8x256xf32>
    %c0_34 = arith.constant 0 : index
    %c34 = arith.constant 34 : index
    %56 = vector.load %arg17[%c0_34, %c34] : memref<8x290xf32, #tpu.memory_space<vmem>>, vector<8x256xf32>
    %cst_35 = arith.constant 0.000000e+00 : f32
    %57 = vector.broadcast %cst_35 : f32 to vector<8x256xf32>
    %58 = arith.select %37, %56, %57 : vector<8x256xi1>, vector<8x256xf32>
    %59 = tpu.concatenate %40, %41, %44, %47, %48, %51, %54, %55, %58 in 0 : vector<8x256xf32>, vector<8x256xf32>, vector<8x256xf32>, vector<8x256xf32>, vector<8x256xf32>, vector<8x256xf32>, vector<8x256xf32>, vector<8x256xf32>, vector<8x256xf32> -> vector<72x256xf32>
    %c0_36 = arith.constant 0 : index
    %c0_37 = arith.constant 0 : index
    %60 = vector.load %arg5[%c0_36, %c0_37] : memref<8x72xf32, #tpu.memory_space<vmem>>, vector<8x72xf32>
    %cst_38 = arith.constant dense<0.000000e+00> : vector<8x256xf32>
    %61 = tpu.matmul %60, %59, %cst_38 {dimension_numbers = #tpu.dot_dimension_numbers<[1], [0], [0], [1], [0, 0, 1, 1], [], []>} : vector<8x72xf32>, vector<72x256xf32>, vector<8x256xf32> -> vector<8x256xf32>
    %c0_39 = arith.constant 0 : index
    %c0_40 = arith.constant 0 : index
    %62 = vector.load %arg6[%c0_39, %c0_40] : memref<8x1xf32, #tpu.memory_space<vmem>>, vector<8x1xf32>
    %63 = vector.broadcast %62 : vector<8x1xf32> to vector<8x256xf32>
    %64 = arith.mulf %61, %63 : vector<8x256xf32>
    %c0_41 = arith.constant 0 : index
    %c0_42 = arith.constant 0 : index
    %65 = vector.load %arg7[%c0_41, %c0_42] : memref<8x1xf32, #tpu.memory_space<vmem>>, vector<8x1xf32>
    %66 = vector.broadcast %65 : vector<8x1xf32> to vector<8x256xf32>
    %67 = arith.addf %64, %66 : vector<8x256xf32>
    %cst_43 = arith.constant 0.000000e+00 : f32
    %68 = vector.broadcast %cst_43 : f32 to vector<8x256xf32>
    %69 = arith.maximumf %67, %68 : vector<8x256xf32>
    %cst_44 = arith.constant 0.000000e+00 : f32
    %70 = vector.broadcast %cst_44 : f32 to vector<8x256xf32>
    %71 = arith.subf %70, %61 : vector<8x256xf32>
    %c0_45 = arith.constant 0 : index
    %c0_46 = arith.constant 0 : index
    %72 = vector.load %arg8[%c0_45, %c0_46] : memref<8x1xf32, #tpu.memory_space<vmem>>, vector<8x1xf32>
    %73 = vector.broadcast %72 : vector<8x1xf32> to vector<8x256xf32>
    %74 = arith.mulf %71, %73 : vector<8x256xf32>
    %c0_47 = arith.constant 0 : index
    %c0_48 = arith.constant 0 : index
    %75 = vector.load %arg9[%c0_47, %c0_48] : memref<8x1xf32, #tpu.memory_space<vmem>>, vector<8x1xf32>
    %76 = vector.broadcast %75 : vector<8x1xf32> to vector<8x256xf32>
    %77 = arith.addf %74, %76 : vector<8x256xf32>
    %cst_49 = arith.constant 0.000000e+00 : f32
    %78 = vector.broadcast %cst_49 : f32 to vector<8x256xf32>
    %79 = arith.maximumf %77, %78 : vector<8x256xf32>
    %c0_50 = arith.constant 0 : index
    %c0_51 = arith.constant 0 : index
    %80 = vector.load %arg10[%c0_50, %c0_51] : memref<16x8xf32, #tpu.memory_space<vmem>>, vector<16x8xf32>
    %cst_52 = arith.constant dense<0.000000e+00> : vector<16x256xf32>
    %81 = tpu.matmul %80, %69, %cst_52 {dimension_numbers = #tpu.dot_dimension_numbers<[1], [0], [0], [1], [0, 0, 1, 1], [], []>} : vector<16x8xf32>, vector<8x256xf32>, vector<16x256xf32> -> vector<16x256xf32>
    %c0_53 = arith.constant 0 : index
    %c0_54 = arith.constant 0 : index
    %82 = vector.load %arg11[%c0_53, %c0_54] : memref<16x8xf32, #tpu.memory_space<vmem>>, vector<16x8xf32>
    %cst_55 = arith.constant dense<0.000000e+00> : vector<16x256xf32>
    %83 = tpu.matmul %82, %79, %cst_55 {dimension_numbers = #tpu.dot_dimension_numbers<[1], [0], [0], [1], [0, 0, 1, 1], [], []>} : vector<16x8xf32>, vector<8x256xf32>, vector<16x256xf32> -> vector<16x256xf32>
    %84 = arith.addf %81, %83 : vector<16x256xf32>
    %c0_56 = arith.constant 0 : index
    %c0_57 = arith.constant 0 : index
    %85 = vector.load %arg12[%c0_56, %c0_57] : memref<16x1xf32, #tpu.memory_space<vmem>>, vector<16x1xf32>
    %86 = vector.broadcast %85 : vector<16x1xf32> to vector<16x256xf32>
    %87 = arith.mulf %84, %86 : vector<16x256xf32>
    %c0_58 = arith.constant 0 : index
    %c0_59 = arith.constant 0 : index
    %88 = vector.load %arg13[%c0_58, %c0_59] : memref<16x1xf32, #tpu.memory_space<vmem>>, vector<16x1xf32>
    %89 = vector.broadcast %88 : vector<16x1xf32> to vector<16x256xf32>
    %90 = arith.addf %87, %89 : vector<16x256xf32>
    %cst_60 = arith.constant 0.000000e+00 : f32
    %91 = vector.broadcast %cst_60 : f32 to vector<16x256xf32>
    %92 = arith.maximumf %90, %91 : vector<16x256xf32>
    %c0_61 = arith.constant 0 : index
    %c0_62 = arith.constant 0 : index
    %93 = vector.load %arg14[%c0_61, %c0_62] : memref<16x4xf32, #tpu.memory_space<vmem>>, vector<16x4xf32>
    %cst_63 = arith.constant dense<0.000000e+00> : vector<16x256xf32>
    %94 = tpu.matmul %93, %1, %cst_63 {dimension_numbers = #tpu.dot_dimension_numbers<[1], [0], [0], [1], [0, 0, 1, 1], [], []>} : vector<16x4xf32>, vector<4x256xf32>, vector<16x256xf32> -> vector<16x256xf32>
    %c0_64 = arith.constant 0 : index
    %c0_65 = arith.constant 0 : index
    %95 = vector.load %arg15[%c0_64, %c0_65] : memref<16x1xf32, #tpu.memory_space<vmem>>, vector<16x1xf32>
    %96 = vector.broadcast %95 : vector<16x1xf32> to vector<16x256xf32>
    %97 = arith.addf %94, %96 : vector<16x256xf32>
    %98 = arith.addf %92, %97 : vector<16x256xf32>
    %c0_66 = arith.constant 0 : index
    %c0_67 = arith.constant 0 : index
    %c0_68 = arith.constant 0 : index
    %99 = vector.load %arg16[%c0_66, %c0_67, %c0_68] : memref<1x16x256xf32, #tpu.memory_space<vmem>>, vector<1x16x256xf32>
    %100 = vector.shape_cast %99 : vector<1x16x256xf32> to vector<16x256xf32>
    %101 = vector.shape_cast %98 : vector<16x256xf32> to vector<1x16x256xf32>
    tpu.vector_store %arg16[%c0_66, %c0_67, %c0_68], %101 {strides = array<i32>} : memref<1x16x256xf32, #tpu.memory_space<vmem>>, vector<1x16x256xf32>,
    return
  }
  func.func @transform_0(%arg0: i32) -> (i32, i32, i32) {
    %c0_i32 = arith.constant 0 : i32
    %c0_i32_0 = arith.constant 0 : i32
    %c0_i32_1 = arith.constant 0 : i32
    return %arg0, %c0_i32, %c0_i32_0 : i32, i32, i32
  }
  func.func @transform_1(%arg0: i32) -> (i32, i32) {
    %c0_i32 = arith.constant 0 : i32
    %c0_i32_0 = arith.constant 0 : i32
    %c0_i32_1 = arith.constant 0 : i32
    return %c0_i32, %c0_i32_0 : i32, i32
  }
  func.func @transform_2(%arg0: i32) -> (i32, i32) {
    %c0_i32 = arith.constant 0 : i32
    %c0_i32_0 = arith.constant 0 : i32
    %c0_i32_1 = arith.constant 0 : i32
    return %c0_i32, %c0_i32_0 : i32, i32
  }
  func.func @transform_3(%arg0: i32) -> (i32, i32) {
    %c0_i32 = arith.constant 0 : i32
    %c0_i32_0 = arith.constant 0 : i32
    %c0_i32_1 = arith.constant 0 : i32
    return %c0_i32, %c0_i32_0 : i32, i32
  }
  func.func @transform_4(%arg0: i32) -> (i32, i32) {
    %c0_i32 = arith.constant 0 : i32
    %c0_i32_0 = arith.constant 0 : i32
    %c0_i32_1 = arith.constant 0 : i32
    return %c0_i32, %c0_i32_0 : i32, i32
  }
  func.func @transform_5(%arg0: i32) -> (i32, i32) {
    %c0_i32 = arith.constant 0 : i32
    %c0_i32_0 = arith.constant 0 : i32
    %c0_i32_1 = arith.constant 0 : i32
    return %c0_i32, %c0_i32_0 : i32, i32
  }
  func.func @transform_6(%arg0: i32) -> (i32, i32) {
    %c0_i32 = arith.constant 0 : i32
    %c0_i32_0 = arith.constant 0 : i32
    %c0_i32_1 = arith.constant 0 : i32
    return %c0_i32, %c0_i32_0 : i32, i32
  }
  func.func @transform_7(%arg0: i32) -> (i32, i32) {
    %c0_i32 = arith.constant 0 : i32
    %c0_i32_0 = arith.constant 0 : i32
    %c0_i32_1 = arith.constant 0 : i32
    return %c0_i32, %c0_i32_0 : i32, i32
  }
  func.func @transform_8(%arg0: i32) -> (i32, i32) {
    %c0_i32 = arith.constant 0 : i32
    %c0_i32_0 = arith.constant 0 : i32
    %c0_i32_1 = arith.constant 0 : i32
    return %c0_i32, %c0_i32_0 : i32, i32
  }
  func.func @transform_9(%arg0: i32) -> (i32, i32) {
    %c0_i32 = arith.constant 0 : i32
    %c0_i32_0 = arith.constant 0 : i32
    %c0_i32_1 = arith.constant 0 : i32
    return %c0_i32, %c0_i32_0 : i32, i32
  }
  func.func @transform_10(%arg0: i32) -> (i32, i32) {
    %c0_i32 = arith.constant 0 : i32
    %c0_i32_0 = arith.constant 0 : i32
    %c0_i32_1 = arith.constant 0 : i32
    return %c0_i32, %c0_i32_0 : i32, i32
  }
  func.func @transform_11(%arg0: i32) -> (i32, i32) {
    %c0_i32 = arith.constant 0 : i32
    %c0_i32_0 = arith.constant 0 : i32
    %c0_i32_1 = arith.constant 0 : i32
    return %c0_i32, %c0_i32_0 : i32, i32
  }
  func.func @transform_12(%arg0: i32) -> (i32, i32) {
    %c0_i32 = arith.constant 0 : i32
    %c0_i32_0 = arith.constant 0 : i32
    %c0_i32_1 = arith.constant 0 : i32
    return %c0_i32, %c0_i32_0 : i32, i32
  }
  func.func @transform_13(%arg0: i32) -> (i32, i32) {
    %c0_i32 = arith.constant 0 : i32
    %c0_i32_0 = arith.constant 0 : i32
    %c0_i32_1 = arith.constant 0 : i32
    return %c0_i32, %c0_i32_0 : i32, i32
  }
  func.func @transform_14(%arg0: i32) -> (i32, i32) {
    %c0_i32 = arith.constant 0 : i32
    %c0_i32_0 = arith.constant 0 : i32
    %c0_i32_1 = arith.constant 0 : i32
    return %c0_i32, %c0_i32_0 : i32, i32
  }
  func.func @transform_15(%arg0: i32) -> (i32, i32, i32) {
    %c0_i32 = arith.constant 0 : i32
    %c0_i32_0 = arith.constant 0 : i32
    %c0_i32_1 = arith.constant 0 : i32
    return %arg0, %c0_i32, %c0_i32_0 : i32, i32, i32
  }
}

</mosaic_0001>

<bundles_post_ra>
// kernel: tpu_custom_call.1
= control target key start
LH: loop header
LB: loop body
LE: loop exit
PB: predicated region body
PF: predicated region fallthrough
CT: control target
= control target key end

     0   :  { %s1763_s0 = inlined_call_operand.vmem [shape: f32[2,4,256], index: 0, kind: input, shape index: {}]   ;;  %s1764_s1 = inlined_call_operand.vmem [shape: f32[8,4], index: 1, kind: input, shape index: {}]   ;;  %s1765_s2 = inlined_call_operand.vmem [shape: f32[8,1], index: 2, kind: input, shape index: {}]   ;;  %s1766_s3 = inlined_call_operand.vmem [shape: f32[8,1], index: 3, kind: input, shape index: {}]   ;;  %s1767_s4 = inlined_call_operand.vmem [shape: f32[8,72], index: 4, kind: input, shape index: {}]   ;;  %s1768_s5 = inlined_call_operand.vmem [shape: f32[8,1], index: 5, kind: input, shape index: {}]   ;;  %s1769_s6 = inlined_call_operand.vmem [shape: f32[8,1], index: 6, kind: input, shape index: {}]   ;;  %s1770_s7 = inlined_call_operand.vmem [shape: f32[8,1], index: 7, kind: input, shape index: {}]   ;;  %s1771_s8 = inlined_call_operand.vmem [shape: f32[8,1], index: 8, kind: input, shape index: {}]   ;;  %s1772_s9 = inlined_call_operand.vmem [shape: f32[16,8], index: 9, kind: input, shape index: {}]   ;;  %s1773_s10 = inlined_call_operand.vmem [shape: f32[16,8], index: 10, kind: input, shape index: {}]   ;;  %s1774_s11 = inlined_call_operand.vmem [shape: f32[16,1], index: 11, kind: input, shape index: {}]   ;;  %s1775_s12 = inlined_call_operand.vmem [shape: f32[16,1], index: 12, kind: input, shape index: {}]   ;;  %s1776_s13 = inlined_call_operand.vmem [shape: f32[16,4], index: 13, kind: input, shape index: {}]   ;;  %s1777_s14 = inlined_call_operand.vmem [shape: f32[16,1], index: 14, kind: input, shape index: {}]   ;;  %s1778_s15 = inlined_call_operand.hbm [shape: f32[2,16,256], index: 15, kind: output, shape index: {}]  }
   0x1   :  { %1782 = sst [smem:[#allocation9_spill]] %s1763_s0 }
   0x2   :  { %1783 = sst [smem:[#allocation10_spill]] %s1764_s1 }
   0x3   :  { %20 = vsyncpa [#allocation4], 0 }
   0x4   :  { %22 = vsyncpa [#allocation4 + $0x1], 0  ;;  %s1501_s18 = smov 0   ;;  %s1503_s19 = smov 0  }
   0x5   :  { %s1505_s20 = smov 0   ;;  %s1507_s21 = smov 0  }
   0x6 LB: > { %1784 = sst [smem:[#allocation6_spill]] %s1401_s20  ;;  %s1522_s22 = sadd.s32 4294967295, %s1405_s21   ;;  %s1405_s21 = sphi %s1507_s21, %s1799_s21   ;;  %s1401_s20 = sphi %s1505_s20, %s1801_s20   ;;  %s1397_s19 = sphi %s1503_s19, %s1803_s19   ;;  %s1393_s18 = sphi %s1501_s18, %s1802_s18  }
   0x7   : > { %s1252_s23 = sadd.s32 4294967294, %s1405_s21   ;;  %s1526_s24 = sadd.s32 1, %s1405_s21  }
   0x8   : > { %1785 = sst [smem:[#allocation7_spill]] %s1526_s24  ;;  %s355_s25 = sadd.s32 1, %s1401_s20 }
   0x9   : > { %s352_s26 = ssub.s32 %s1405_s21, %s1526_s24  ;;  %p365_p0 = scmp.ne.s32.totalorder %s1401_s20, %s1397_s19 }
   0xa   : > { %p353_p1 = scmp.eq.s32.totalorder %s352_s26, 0  ;;  %p366_p2 = scmp.eq.s32.totalorder %s1522_s22, 1 }
   0xb   : > { %p371_p3 = scmp.ne.s32.totalorder %s1397_s19, %s1393_s18  ;;  %p372_p4 = scmp.eq.s32.totalorder %s1252_s23, 1 }
   0xc   : > { %s1537_s27 = scalar_select %p353_p1, %s1401_s20, %s355_s25  }
   0xd   : > { %p1539_p5 = por %p366_p2, %p365_p0  ;;  %p1543_p6 = por %p372_p4, %p371_p3 }
   0xe   : > { %1786 = sst [smem:[#allocation8_spill]] %s1537_s27  ;;  %p1255_p7 = scmp.ge.s32.totalorder %s1405_s21, 1 }
   0xf   : > { %p440_p8 = scmp.lt.s32.totalorder %s1405_s21, 3 }
  0x11   : > { %p441_p9 = pnand %p1255_p7, %p440_p8 }
  0x12   : > { %p488_p10 = scmp.lt.s32.totalorder (!%p441_p9), %s1522_s22, 1  ;;  %s1789_s0 = sld [smem:[#allocation9_spill]] (!%p441_p9) }
  0x13   : > { %444 = sbr.rel (%p441_p9) target bundleno = 957 (0x3bd), region = 80  ;;  %s1790_s1 = sld [smem:[#allocation10_spill]] (!%p441_p9) }
  0x14   : > { %s1409_s20 = smov (!%p441_p9), 17   ;;  %s1411_s27 = smov (!%p441_p9), 95  }
  0x15   : > { %s1413_s23 = smov (!%p441_p9), 110   ;;  %s1414_s25 = smov (!%p441_p9), 111  }
  0x16   : > { %s1416_s30 = smov (!%p441_p9), 126   ;;  %s1417_s16 = smov (!%p441_p9), 127  }
  0x18   : > { %v1407_v0 = vmov 0.0   ;;  %v1408_v1 = vmov 0   ;;  %v577_v2 = vld [vmem:[%s1765_s2] sm:$0xff]  ;;  %s489_s17 = scalar_select %p488_p10, %s1522_s22, 1  ;;  %vm501_vm0 = vcmask 1043456   ;;  %vm497_vm1 = vcmask 31744  }
  0x19   : > { %570 = vmatprep.mubr.f32.mxu1 %v1407_v0  ;;  %1342 = vset.pattern.permute.xlu0 %v1408_v1  ;;  %v585_v3 = vld [vmem:[%s1766_s3] sm:$0xff]  ;;  %vm595_vm2 = vcmask 138240   ;;  %vm597_vm3 = vcmask 277640   ;;  %vm609_vm4 = vcmask 1047688   ;;  %v1036_v29 = vld [vmem:[%s1774_s11 + $0x8] sm:$0xff]  ;;  %v613_v38 = vlaneseq }
  0x1a   : > { %580 = vperm.xlu0 %1342, %v577_v2   ;;  %1343 = vset.pattern.permute.xlu1 %v1408_v1  ;;  %s1288_s26 = sshll.u32 %s489_s17, 3  ;;  %v494_v6 = vld [vmem:[%s1790_s1] sm:$0xff]  ;;  %596 = vst.msk [vmem:[#allocation2] sm:$0xff] %vm595_vm2, %v1407_v0  ;;  %s1412_s17 = smov 96   ;;  %v1052_v30 = vld [vmem:[%s1775_s12 + $0x8] sm:$0xff]  ;;  %vm710_vm5 = vcmask 769024  }
  0x1b   : > { %939 = vmatprep.mubr.f32.mxu0 %v1407_v0  ;;  %s492_s24 = scalar_lea.vmem %s1789_s0, %s1288_s26  ;;  %598 = vst.msk [vmem:[#allocation2 + $0x10] sm:$0xff] %vm597_vm3, %v1407_v0  ;;  %s1415_s26 = smov 112   ;;  %v846_v22 = vld [vmem:[%s1770_s7] sm:$0xff]  ;;  %v1074_v31 = vld [vmem:[%s1777_s14 + $0x8] sm:$0xff]  ;;  %v614_v41 = vand.u32 127, %v613_v38  ;;  %vm745_vm7 = vcmask 777216  }
  0x1c   : > { %v1562_v4 = vld [vmem:[%s492_s24] sm:$0xff]  ;;  %s1410_s24 = smov 94   ;;  %vm697_vm9 = vcmask 785408   ;;  %vm684_vm11 = vcmask 900096   ;;  %vm734_vm13 = vcmask 908288   ;;  %vm671_vm14 = vcmask 916480  }
  0x1d   : > { %v1566_v5 = vcombine.high %v1562_v4, %v1562_v4  ;;  %v826_v23 = vld [vmem:[%s1768_s5] sm:$0xff]  ;;  %v615_v44 = vadd.s32 128, %v614_v41  ;;  %v620_v50 = vand.u32 15, %v614_v41  ;;  %vm658_vm15 = vcmask 1031168  }
  0x1e   : > { %588 = vperm.xlu0 %1342, %v585_v3   ;;  %v1035_v24 = vld [vmem:[%s1774_s11] sm:$0xff]  ;;  %vm751_vm3 = vcmask 588800  }
  0x1f   : > { %1259 = vmatprep.subr.msk.mxu1 %vm501_vm0, %v1566_v5  ;;  %v1051_v25 = vld [vmem:[%s1775_s12] sm:$0xff]  ;;  %v627_v47 = vand.u32 15, %v615_v44  ;;  %vm1636_vm8 = vcmp.le.s32.totalorder %v620_v50, 14  ;;  %vm1648_vm12 = vcmp.ge.s32.totalorder %v620_v50, 1  ;;  %v865_v44 = vld [vmem:[%s1772_s9 + $0x8] sm:$0xff] }
  0x20   : > { %1260 = vmatpush1.msk.msra.mxu1 %vm501_vm0, %v1562_v4  ;;  %v854_v26 = vld [vmem:[%s1771_s8] sm:$0xff] }
  0x21   : > { %1261 = vmatmul.mubr.msk.f32.vlgmr.msra.gmra.mxu1 %vm497_vm1, %v494_v6  ;;  %v1073_v27 = vld [vmem:[%s1777_s14] sm:$0xff]  ;;  %vm1632_vm6 = vcmp.le.s32.totalorder %v627_v47, 14  ;;  %vm1644_vm10 = vcmp.ge.s32.totalorder %v627_v47, 1 }
  0x22   : > { %819 = vmatprep.mubr.f32.mxu1 %v1407_v0  ;;  %v834_v28 = vld [vmem:[%s1769_s6] sm:$0xff] }
  0x95   : > { %v581_v7 = vpop.permute.xlu0 %580 }
  0x99   : > { %v589_v10 = vpop.permute.xlu0 %588 }
  0xe1   : > { %v572_v8 = vpop.f32.mrf.mxu1 }
  0xe2   : > { %v583_v9 = vmul.f32 %v581_v7, %v572_v8 }
  0xe3   : > { %v574_v11 = vpop.f32.mrf.mxu1 }
  0xe4   : > { %v584_v12 = vmul.f32 %v581_v7, %v574_v11  ;;  %v591_v13 = vadd.f32 %v589_v10, %v583_v9 }
  0xe6   : > { %v592_v14 = vadd.f32 %v589_v10, %v584_v12  ;;  %v593_v15 = vmax.f32 %v591_v13, 0.0 }
  0xe8   : > { %601 = vrot.lane.b32.xlu1 %v593_v15, %s1409_s20  ;;  %v594_v16 = vmax.f32 %v592_v14, 0.0 }
  0xec   : > { %603 = vrot.lane.b32.xlu1 %v594_v16, %s1409_s20 }
 0x15a   : > { %v602_v17 = vpop.permute.xlu1 %601 }
 0x15b   : > { %610 = vst.msk [vmem:[#allocation2] sm:$0xff] %vm609_vm4, %v602_v17  ;;  %vm868_vm4 = vcmask 64512  }
 0x15e   : > { %v604_v18 = vpop.permute.xlu1 %603 }
 0x15f   : > { %v1581_v19 = vsel %vm595_vm2, %v602_v17, %v604_v18  ;;  %612 = vst.msk [vmem:[#allocation2 + $0x10] sm:$0xff] %vm595_vm2, %v604_v18  ;;  %vm723_vm2 = vcmask 1039360  }
 0x162   : > { %v1584_v20 = vld [vmem:[#allocation2] sm:$0xff] }
 0x163   : > { %704 = vrot.lane.b32.xlu0 %v1584_v20, %s1410_s24  ;;  %739 = vrot.lane.b32.xlu1 %v1584_v20, %s1411_s27 }
 0x166   : > { %v648_v21 = vld [vmem:[#allocation2 + $0x10] sm:$0xff] }
 0x167   : > { %691 = vrot.lane.b32.xlu0 %v1584_v20, %s1412_s17  ;;  %678 = vrot.lane.b32.xlu1 %v1584_v20, %s1413_s23 }
 0x16b   : > { %728 = vrot.lane.b32.xlu0 %v1584_v20, %s1414_s25  ;;  %665 = vrot.lane.b32.xlu1 %v1584_v20, %s1415_s26 }
 0x16f   : > { %652 = vrot.lane.b32.xlu0 %v1584_v20, %s1416_s30  ;;  %708 = vrot.lane.b32.xlu1 %v648_v21, %s1410_s24 }
 0x173   : > { %743 = vrot.lane.b32.xlu0 %v648_v21, %s1411_s27  ;;  %695 = vrot.lane.b32.xlu1 %v648_v21, %s1412_s17 }
 0x177   : > { %682 = vrot.lane.b32.xlu0 %v648_v21, %s1413_s23  ;;  %732 = vrot.lane.b32.xlu1 %v648_v21, %s1414_s25 }
 0x17b   : > { %669 = vrot.lane.b32.xlu0 %v648_v21, %s1415_s26  ;;  %656 = vrot.lane.b32.xlu1 %v648_v21, %s1416_s30 }
 0x17f   : > { %741 = vrot.lane.b32.xlu1 %v1581_v19, %s1411_s27  ;;  %706 = vrot.lane.b32.xlu0 %v1581_v19, %s1410_s24 }
 0x183   : > { %680 = vrot.lane.b32.xlu1 %v1581_v19, %s1413_s23  ;;  %693 = vrot.lane.b32.xlu0 %v1581_v19, %s1412_s17  ;;  %s485_s17 = sand.u32 1, %s1397_s19   ;;  %s1418_s23 = smov [#allocation3]  }
 0x187   : > { %667 = vrot.lane.b32.xlu1 %v1581_v19, %s1415_s26  ;;  %730 = vrot.lane.b32.xlu0 %v1581_v19, %s1414_s25  ;;  %s1256_s25 = sshll.u32 %s485_s17, 5 }
 0x188   : > { %s487_s26 = scalar_lea.vmem [#allocation3], %s1256_s25  ;;  %s1349_s25 = sshll.u32 %s1418_s23, 4  ;;  %s1350_s25 = int_to_ptr.vmem [resolvable:$false] %s1349_s25 }
 0x189   : > { %s1190_s0 = sshll.u32 %s487_s26, 4  ;;  %s1714_s0 = int_to_ptr.vmem [resolvable:$true] %s1190_s0 }
 0x18a   : > { %s1345_s24 = scalar_lea.vmem %s1714_s0, 512  ;;  %p1352_p0 = scmp.lt.s32.totalorder %s1714_s0, %s1350_s25 }
 0x18b   : > { %719 = vrot.lane.b32.xlu1 %v1581_v19, %s1417_s16  ;;  %654 = vrot.lane.b32.xlu0 %v1581_v19, %s1416_s30  ;;  %s1289_s30 = sshll.u32 %s1522_s22, 9  ;;  %s1723_s22 = scalar_lea.sflag [#allocation4], %s485_s17 }
 0x18c   : > { %s1719_s27 = scalar_lea.hbm %s1778_s15, %s1289_s30  ;;  %p1346_p11 = scmp.ne.s32.totalorder %s1714_s0, %s1345_s24 }
 0x18e   : > { %p1347_p12 = pnand %p1346_p11, %p1539_p5 }
 0x18f   : > { %717 = vrot.lane.b32.xlu1 %v1584_v20, %s1417_s16  ;;  %721 = vrot.lane.b32.xlu0 %v648_v21, %s1417_s16  ;;  %s1351_s16 = scalar_lea.vmem %s1350_s25, 1024 }
 0x190   : > { %p1348_p13 = pneg %p1347_p12  ;;  %p1353_p1 = scmp.lt.s32.totalorder %s1351_s16, %s1345_s24 }
 0x192   : > { %p1354_p2 = por %p1353_p1, %p1352_p0 }
 0x193   : > { %849 = vperm.xlu0 %1342, %v846_v22   ;;  %857 = vperm.xlu1 %1343, %v854_v26   ;;  %v750_v22 = vld [vmem:[%s1767_s4] sm:$0xff] }
 0x194   : > { %p1355_p3 = pnand %p1354_p2, %p1348_p13 }
 0x197   : > { %829 = vperm.xlu0 %1342, %v826_v23   ;;  %837 = vperm.xlu1 %1343, %v834_v28  }
 0x19b   : > { %1039 = vperm.xlu0 %1342, %v1035_v24   ;;  %1044 = vperm.xlu1 %1343, %v1036_v29  }
 0x19f   : > { %1055 = vperm.xlu0 %1342, %v1051_v25   ;;  %1060 = vperm.xlu1 %1343, %v1052_v30  }
 0x1a3   : > { %1077 = vperm.xlu0 %1342, %v1073_v27   ;;  %1082 = vperm.xlu1 %1343, %v1074_v31  }
 0x1d5   : > { %v705_v32 = vpop.permute.xlu0 %704  ;;  %v740_v33 = vpop.permute.xlu1 %739 }
 0x1d9   : > { %v692_v34 = vpop.permute.xlu0 %691  ;;  %v679_v35 = vpop.permute.xlu1 %678 }
 0x1dd   : > { %v729_v36 = vpop.permute.xlu0 %728  ;;  %v666_v37 = vpop.permute.xlu1 %665 }
 0x1e1   : > { %v653_v39 = vpop.permute.xlu0 %652  ;;  %v709_v40 = vpop.permute.xlu1 %708 }
 0x1e5   : > { %v744_v42 = vpop.permute.xlu0 %743  ;;  %v696_v43 = vpop.permute.xlu1 %695 }
 0x1e9   : > { %v683_v45 = vpop.permute.xlu0 %682  ;;  %v733_v46 = vpop.permute.xlu1 %732 }
 0x1ed   : > { %v670_v48 = vpop.permute.xlu0 %669  ;;  %v657_v49 = vpop.permute.xlu1 %656 }
 0x1f1   : > { %v707_v52 = vpop.permute.xlu0 %706  ;;  %v742_v53 = vpop.permute.xlu1 %741 }
 0x1f2   : > { %v711_v55 = vsel %vm710_vm5, %v705_v32, %v707_v52  ;;  %v712_v56 = vsel %vm710_vm5, %v707_v52, %v709_v40  ;;  %v747_v57 = vsel %vm745_vm7, %v742_v53, %v744_v42  ;;  %v746_v59 = vsel %vm745_vm7, %v740_v33, %v742_v53  ;;  %v867_v42 = vld [vmem:[%s1773_s10 + $0x8] sm:$0xff] }
 0x1f3   : > { %1262 = vmatprep.subr.msk.mxu1 %vm1632_vm6, %v712_v56 }
 0x1f4   : > { %1263 = vmatpush1.msk.msra.mxu1 %vm1636_vm8, %v711_v55 }
 0x1f5   : > { %v694_v60 = vpop.permute.xlu0 %693  ;;  %771 = vmatprep.subr.mxu1 %v747_v57  ;;  %v681_v61 = vpop.permute.xlu1 %680 }
 0x1f6   : > { %v698_v63 = vsel %vm697_vm9, %v692_v34, %v694_v60  ;;  %v699_v1 = vsel %vm697_vm9, %v694_v60, %v696_v43  ;;  %772 = vmatpush1.msra.mxu1 %v746_v59  ;;  %v686_v2 = vsel %vm684_vm11, %v681_v61, %v683_v45  ;;  %v685_v3 = vsel %vm684_vm11, %v679_v35, %v681_v61  ;;  %v864_v43 = vld [vmem:[%s1772_s9] sm:$0xff] }
 0x1f7   : > { %1264 = vmatprep.subr.msk.mxu1 %vm1644_vm10, %v699_v1 }
 0x1f8   : > { %1265 = vmatpush1.msk.msra.mxu1 %vm1648_vm12, %v698_v63 }
 0x1f9   : > { %v731_v6 = vpop.permute.xlu0 %730  ;;  %1266 = vmatprep.subr.msk.mxu1 %vm1632_vm6, %v686_v2  ;;  %v668_v7 = vpop.permute.xlu1 %667 }
 0x1fa   : > { %v735_v8 = vsel %vm734_vm13, %v729_v36, %v731_v6  ;;  %1267 = vmatpush1.msk.msra.mxu1 %vm1636_vm8, %v685_v3  ;;  %v736_v9 = vsel %vm734_vm13, %v731_v6, %v733_v46  ;;  %v673_v10 = vsel %vm671_vm14, %v668_v7, %v670_v48  ;;  %v672_v11 = vsel %vm671_vm14, %v666_v37, %v668_v7 }
 0x1fb   : > { %777 = vmatprep.subr.mxu1 %v736_v9 }
 0x1fc   : > { %778 = vmatpush1.msra.mxu1 %v735_v8 }
 0x1fd   : > { %v655_v12 = vpop.permute.xlu0 %654  ;;  %1268 = vmatprep.subr.msk.mxu1 %vm1644_vm10, %v673_v10  ;;  %v720_v13 = vpop.permute.xlu1 %719 }
 0x1fe   : > { %v659_v14 = vsel %vm658_vm15, %v653_v39, %v655_v12  ;;  %v660_v15 = vsel %vm658_vm15, %v655_v12, %v657_v49  ;;  %1269 = vmatpush1.msk.msra.mxu1 %vm1648_vm12, %v672_v11 }
 0x1ff   : > { %1270 = vmatprep.subr.msk.mxu1 %vm1632_vm6, %v660_v15 }
 0x200   : > { %1271 = vmatpush1.msk.msra.mxu1 %vm1636_vm8, %v659_v14 }
 0x201   : > { %v722_v16 = vpop.permute.xlu0 %721  ;;  %v718_v17 = vpop.permute.xlu1 %717 }
 0x202   : > { %v724_v18 = vsel %vm723_vm2, %v718_v17, %v720_v13  ;;  %v725_v21 = vsel %vm723_vm2, %v720_v13, %v722_v16 }
 0x203   : > { %783 = vmatprep.subr.mxu1 %v725_v21 }
 0x204   : > { %784 = vmatpush1.msra.mxu1 %v724_v18 }
 0x205   : > { %1272 = vmatprep.subr.msk.mxu1 %vm1644_vm10, %v1581_v19 }
 0x206   : > { %1273 = vmatpush1.msk.msra.mxu1 %vm1648_vm12, %v1584_v20  ;;  %v866_v20 = vld [vmem:[%s1773_s10] sm:$0xff] }
 0x207   : > { %1274 = vmatmul.mubr.msk.f32.vlgmr.msra.gmra.mxu1 %vm751_vm3, %v750_v22 }
 0x20e   : > { %v850_v23 = vpop.permute.xlu0 %849  ;;  %v858_v24 = vpop.permute.xlu1 %857 }
 0x212   : > { %v830_v27 = vpop.permute.xlu0 %829  ;;  %v838_v34 = vpop.permute.xlu1 %837 }
 0x216   : > { %v1040_v47 = vpop.permute.xlu0 %1039  ;;  %v1045_v50 = vpop.permute.xlu1 %1044 }
 0x21a   : > { %v1056_v53 = vpop.permute.xlu0 %1055  ;;  %v1061_v60 = vpop.permute.xlu1 %1060 }
 0x21e   : > { %v1078_v2 = vpop.permute.xlu0 %1077  ;;  %v1083_v15 = vpop.permute.xlu1 %1082 }
 0x2c7   : > { %v821_v25 = vpop.f32.mrf.mxu1 }
 0x2c8   : > { %v844_v26 = vsub.f32 0.0, %v821_v25  ;;  %v832_v32 = vmul.f32 %v830_v27, %v821_v25 }
 0x2c9   : > { %v823_v28 = vpop.f32.mrf.mxu1 }
 0x2ca   : > { %v852_v29 = vmul.f32 %v850_v23, %v844_v26  ;;  %v833_v30 = vmul.f32 %v830_v27, %v823_v28  ;;  %v845_v31 = vsub.f32 0.0, %v823_v28  ;;  %v840_v37 = vadd.f32 %v838_v34, %v832_v32 }
 0x2cc   : > { %v853_v33 = vmul.f32 %v850_v23, %v845_v31  ;;  %v860_v35 = vadd.f32 %v858_v24, %v852_v29  ;;  %v841_v36 = vadd.f32 %v838_v34, %v833_v30  ;;  %v842_v41 = vmax.f32 %v840_v37, 0.0 }
 0x2ce   : > { %v861_v19 = vadd.f32 %v858_v24, %v853_v33  ;;  %v862_v39 = vmax.f32 %v860_v35, 0.0  ;;  %v843_v40 = vmax.f32 %v841_v36, 0.0 }
 0x2d0   : > { %v863_v38 = vmax.f32 %v861_v19, 0.0 }
 0x2d2   : > { %905 = vmatprep.subr.mxu0 %v863_v38 }
 0x2d3   : > { %906 = vmatpush1.msra.mxu0 %v862_v39 }
 0x2d4   : > { %1275 = vmatmul.mubr.msk.f32.vlgmr.msra.gmra.mxu0 %vm868_vm4, %v866_v20  ;;  %988 = vmatprep.subr.mxu0 %v843_v40 }
 0x2d5   : > { %989 = vmatpush1.msra.mxu0 %v842_v41  ;;  %945 = vmatprep.mubr.f32.mxu0 %v1407_v0 }
 0x2d6   : > { %1279 = vmatprep.subr.msk.mxu0 %vm501_vm0, %v1566_v5  ;;  %v1071_v5 = vld [vmem:[%s1776_s13] sm:$0xff] }
 0x2d8   : > { %1276 = vmatmul.mubr.msk.f32.gmra.mxu0 %vm868_vm4, %v867_v42 }
 0x2d9   : > { %1022 = vmatprep.mubr.f32.mxu0 %v1407_v0 }
 0x2dc   : > { %1277 = vmatmul.mubr.msk.f32.vlgmr.msra.gmra.mxu0 %vm868_vm4, %v864_v43 }
 0x2dd   : > { %1280 = vmatpush1.msk.msra.mxu0 %vm501_vm0, %v1562_v4  ;;  %1028 = vmatprep.mubr.f32.mxu0 %v1407_v0  ;;  %v1072_v4 = vld [vmem:[%s1776_s13 + $0x8] sm:$0xff] }
 0x2e0   : > { %1278 = vmatmul.mubr.msk.f32.gmra.mxu0 %vm868_vm4, %v865_v44 }
 0x2e1   : > { %1155 = vmatprep.mubr.f32.mxu0 %v1407_v0 }
 0x2e4   : > { %1281 = vmatmul.mubr.msk.f32.vlgmr.msra.gmra.mxu0 %vm497_vm1, %v1071_v5 }
 0x2e5   : > { %1161 = vmatprep.mubr.f32.mxu0 %v1407_v0 }
 0x2e8   : > { %1282 = vmatmul.mubr.msk.f32.gmra.mxu0 %vm497_vm1, %v1072_v4 }
 0x394   : > { %v941_v45 = vpop.f32.mrf.mxu0 }
 0x396   : > { %v943_v46 = vpop.f32.mrf.mxu0 }
 0x398   : > { %v947_v48 = vpop.f32.mrf.mxu0 }
 0x39a   : > { %v949_v49 = vpop.f32.mrf.mxu0 }
 0x39c   : > { %v1024_v51 = vpop.f32.mrf.mxu0 }
 0x39d   : > { %v1025_v52 = vadd.f32 %v1024_v51, %v941_v45 }
 0x39e   : > { %v1026_v54 = vpop.f32.mrf.mxu0 }
 0x39f   : > { %v1047_v55 = vmul.f32 %v1040_v47, %v1025_v52  ;;  %v1027_v0 = vadd.f32 %v1026_v54, %v943_v46 }
 0x3a0   : > { %v1030_v56 = vpop.f32.mrf.mxu0 }
 0x3a1   : > { %v1063_v57 = vadd.f32 %v1056_v53, %v1047_v55  ;;  %v1048_v58 = vmul.f32 %v1040_v47, %v1027_v0  ;;  %v1031_v59 = vadd.f32 %v1030_v56, %v947_v48 }
 0x3a2   : > { %v1032_v61 = vpop.f32.mrf.mxu0 }
 0x3a3   : > { %v1064_v62 = vadd.f32 %v1056_v53, %v1048_v58  ;;  %v1049_v63 = vmul.f32 %v1045_v50, %v1031_v59  ;;  %v1033_v1 = vadd.f32 %v1032_v61, %v949_v49  ;;  %v1067_v8 = vmax.f32 %v1063_v57, 0.0 }
 0x3a4   : > { %v1157_v3 = vpop.f32.mrf.mxu0 }
 0x3a5   : > { %v1065_v6 = vadd.f32 %v1061_v60, %v1049_v63  ;;  %v1050_v7 = vmul.f32 %v1045_v50, %v1033_v1  ;;  %v1158_v9 = vadd.f32 %v1157_v3, %v1078_v2  ;;  %v1068_v13 = vmax.f32 %v1064_v62, 0.0 }
 0x3a6   : > { %v1159_v10 = vpop.f32.mrf.mxu0 }
 0x3a7   : > { %v1066_v11 = vadd.f32 %v1061_v60, %v1050_v7  ;;  %v1168_v12 = vadd.f32 %v1158_v9, %v1067_v8  ;;  %v1160_v14 = vadd.f32 %v1159_v10, %v1078_v2  ;;  %v1069_v18 = vmax.f32 %v1065_v6, 0.0 }
 0x3a8   : > { %v1163_v16 = vpop.f32.mrf.mxu0 }
 0x3a9   : > { %1172 = vst [vmem:[%s487_s26] sm:$0xff] %v1168_v12  ;;  %v1169_v17 = vadd.f32 %v1160_v14, %v1068_v13  ;;  %v1164_v21 = vadd.f32 %v1163_v16, %v1083_v15  ;;  %v1070_v24 = vmax.f32 %v1066_v11, 0.0 }
 0x3aa   : > { %v1165_v22 = vpop.f32.mrf.mxu0 }
 0x3ab   : > { %1173 = vst [vmem:[%s487_s26 + $0x8] sm:$0xff] %v1169_v17  ;;  %v1170_v23 = vadd.f32 %v1164_v21, %v1069_v18  ;;  %v1166_v25 = vadd.f32 %v1165_v22, %v1083_v15 }
 0x3ad   : > { %1174 = vst [vmem:[%s487_s26 + $0x10] sm:$0xff] %v1170_v23  ;;  %v1171_v26 = vadd.f32 %v1166_v25, %v1070_v24 }
 0x3af   : > { %1175 = vst [vmem:[%s487_s26 + $0x18] sm:$0xff] %v1171_v26 }
 0x3b0   : > { %1358 = shalt.err (!%p1355_p3)
}
 0x3b1   : > { %s1359_s17 = scalar_lea.hbm %s1719_s27, 512  ;;  %s1363_s20 = scalar_lea.hbm %s1778_s15, 1024 }
 0x3b2   : > { %p1360_p4 = scmp.ne.s32.totalorder %s1719_s27, %s1359_s17  ;;  %p1364_p9 = scmp.lt.s32.totalorder %s1719_s27, %s1778_s15 }
 0x3b3   : > { %p1365_p10 = scmp.lt.s32.totalorder %s1363_s20, %s1359_s17 }
 0x3b4   : > { %p1361_p7 = pnand %p1360_p4, %p1539_p5 }
 0x3b5   : > { %p1366_p11 = por %p1365_p10, %p1364_p9 }
 0x3b6   : > { %p1362_p8 = pneg %p1361_p7 }
 0x3b8   : > { %p1367_p12 = pnand %p1366_p11, %p1362_p8 }
 0x3ba   : > { %1370 = shalt.err (!%p1367_p12)
}
 0x3bb   : > { %s1419_s24 = smov 256   ;;  %s1420_s25 = smov 16  }
 0x3bc   : > { %1290 = dma.vmem_to_hbm [thread:$0]  (%p1539_p5), %s1714_s0, 512, %s1719_s27, %s1723_s22, %s1419_s24, %s1419_s24, %s1420_s25  }
 0x3bd PF: > { %p1296_p13 = scmp.ge.s32.totalorder %s1405_s21, 2  ;;  %s1205_s16 = sand.u32 1, %s1393_s18  }
 0x3be   : > { %s1206_s1 = scalar_lea.sflag [#allocation4], %s1205_s16 }
 0x3bf   : > { %p1293_p0 = pnand %p1296_p13, %p1543_p6 }
 0x3c1   : > { %p1294_p1 = pneg %p1293_p0 }
 0x3c3   : > { %1388 = dma.done.wait (%p1294_p1), %s1206_s1, 512  }
 0x3c4   : > { %1390 = vsyncadd (%p1294_p1), %s1206_s1, 4294966784  ;;  %s1799_s21 = sld [smem:[#allocation7_spill]]  ;;  %s1802_s18 = smov %s1397_s19 }
 0x3c5   : > { %s1800_s17 = sld [smem:[#allocation6_spill]] }
 0x3c6   : > { %s1801_s20 = sld [smem:[#allocation8_spill]] }
 0x3ca   : > { %p25_p2 = scmp.ge.s32.totalorder %s1799_s21, 4  }
 0x3cb   : > { %s1803_s19 = smov %s1800_s17 }
 0x3cc   :  { %27 = sbr.rel (!%p25_p2) target bundleno = 6 (0x6), region = 115 }
 0x3d1   :  { %1211 = vsyncpa [#allocation4], 1 }
 0x3d2   :  { %1213 = vsyncpa [#allocation4 + $0x1], 1 }

</bundles_post_ra>
